<compile_context>
chip_gen: v5e
topology: v5e:2x2
jax: 0.10.0
libtpu: 0.0.40
codegen_flags: <defaults>
</compile_context>

<pallas_src>
import jax
import jax.numpy as jnp
from jax import lax
from jax.experimental import pallas as pl
from jax.experimental.pallas import tpu as pltpu

EPS = 1e-5


def _bn_relu_conv1x1_kernel(x_ref, scale1_ref, shift1_ref, w1_ref, cb1_ref,
                            h_ref, edges_ref, stats_ref):
    # x_ref     : (1, C_in, Lt)   input tile (channels on sublanes, L on lanes)
    # scale1/shift1 : (C_in, 1)   folded BN1 affine (global stats from wrapper)
    # w1_ref    : (mid, C_in)     1x1 conv weight
    # cb1_ref   : (mid, 1)        1x1 conv bias
    # h_ref     : (1, mid, Lt)    intermediate activations (bf16 in HBM)
    # edges_ref : (1, 1, mid, 2)  [first, last] h column of this tile (halo for pass 2)
    # stats_ref : (1, 1, mid, 2)  per-tile [sum(h), sum(h*h)] in f32 (global BN2 stats)
    x = x_ref[0].astype(jnp.float32)                                   # (C_in, Lt)
    y = jnp.maximum(x * scale1_ref[...] + shift1_ref[...], 0.0)        # BN1 + ReLU
    h = jnp.dot(w1_ref[...], y, preferred_element_type=jnp.float32)    # (mid, Lt)
    h = h + cb1_ref[...]

    h_ref[0] = h.astype(h_ref.dtype)

    lt = h.shape[-1]
    edges_ref[0, 0] = jnp.concatenate([h[:, 0:1], h[:, lt - 1:lt]],
                                      axis=1).astype(edges_ref.dtype)

    # BN2 statistics accumulated from the full-precision h (before the bf16 cast).
    s = jnp.sum(h, axis=1, keepdims=True)                              # (mid, 1)
    ss = jnp.sum(h * h, axis=1, keepdims=True)                         # (mid, 1)
    stats_ref[0, 0] = jnp.concatenate([s, ss], axis=1)                 # (mid, 2)


def _bn_relu_conv3_concat_kernel(x_ref, h_ref, eprev_ref, enext_ref,
                                 scale2_ref, shift2_ref, w2_ref, cb2_ref, out_ref):
    # x_ref     : (1, C_in, Lt)     original input tile (copied through into the output)
    # h_ref     : (1, mid, Lt)      intermediate activations (bf16)
    # eprev_ref : (1, 1, mid, 2)    edges of tile j-1 (clamped); column 1 = its last column
    # enext_ref : (1, 1, mid, 2)    edges of tile j+1 (clamped); column 0 = its first column
    # scale2/shift2 : (mid, 1)      folded BN2 affine (global stats from wrapper)
    # w2_ref    : (3*C_out, mid)    k=3 conv weights, taps stacked along rows
    # cb2_ref   : (C_out, 1)        k=3 conv bias
    # out_ref   : (1, C_in + C_out, Lt)   [x ; new features] (fused concat)
    j = pl.program_id(1)
    nj = pl.num_programs(1)
    c_out = cb2_ref.shape[0]

    h = h_ref[0].astype(jnp.float32)                                   # (mid, Lt)
    lt = h.shape[-1]
    a = jnp.maximum(h * scale2_ref[...] + shift2_ref[...], 0.0)        # BN2 + ReLU

    # All three taps in one MXU call: (3*C_out, mid) @ (mid, Lt).
    zz = jnp.dot(w2_ref[...], a, preferred_element_type=jnp.float32)   # (3*C_out, Lt)
    u = zz[:c_out, :]                  # tap 0 -> multiplies a[:, t-1]
    c = zz[c_out:2 * c_out, :]         # tap 1 -> centre
    v = zz[2 * c_out:, :]              # tap 2 -> multiplies a[:, t+1]

    # Halo columns (h of neighbouring tiles), BN2+ReLU'd here; one tiny (mid, 2) matmul.
    h_halo = jnp.concatenate([eprev_ref[0, 0, :, 1:2],
                              enext_ref[0, 0, :, 0:1]], axis=1).astype(jnp.float32)
    a_halo = jnp.maximum(h_halo * scale2_ref[...] + shift2_ref[...], 0.0)        # (mid, 2)
    zz_halo = jnp.dot(w2_ref[...], a_halo, preferred_element_type=jnp.float32)   # (3*C_out, 2)
    left = jnp.where(j == 0, 0.0, zz_halo[:c_out, 0:1])            # u at global col t0-1
    right = jnp.where(j == nj - 1, 0.0, zz_halo[2 * c_out:, 1:2])  # v at global col t0+Lt

    z = c + cb2_ref[...]
    z = z + jnp.concatenate([left, u[:, :lt - 1]], axis=1)          # + u[:, t-1]
    z = z + jnp.concatenate([v[:, 1:], right], axis=1)              # + v[:, t+1]

    out_ref[0] = jnp.concatenate([x_ref[0].astype(jnp.float32), z],
                                 axis=0).astype(out_ref.dtype)


def _choose_l_tile(l, cap=1024):
    """Largest multiple of 128 that divides L (capped), else full L."""
    if l % 128 != 0:
        return l
    t = min(cap, l)
    t -= t % 128
    while l % t != 0:
        t -= 128
    return t


def dense_layer(x_ncl, params):
    """x_ncl: (N, C_in, L), PyTorch NCL layout. Returns (N, C_in + C_out, L)."""
    g1, b1, w1, cb1, g2, b2, w2, cb2 = params
    n, c_in, l = x_ncl.shape
    mid = w1.shape[0]
    c_out = w2.shape[0]

    xf = x_ncl.astype(jnp.float32)

    # ---- BN1 global batch statistics (cheap XLA reduction over x), folded affine ----
    m1 = jnp.mean(xf, axis=(0, 2))
    v1 = jnp.mean(jnp.square(xf - m1[None, :, None]), axis=(0, 2))
    scale1 = g1 * lax.rsqrt(v1 + EPS)
    shift1 = b1 - m1 * scale1

    lt = _choose_l_tile(l)
    n_lt = l // lt
    w1_2d = w1[:, :, 0]                                   # (mid, C_in)
    vmem_limit = 32 * 1024 * 1024

    # ---- pass 1: BN1 + ReLU + 1x1 conv, tiled over (N, L/Lt) ----
    # Emits bf16 h, per-tile halo edge columns, and f32 partial sums for BN2 stats.
    h, edges, partial_stats = pl.pallas_call(
        _bn_relu_conv1x1_kernel,
        grid=(n, n_lt),
        in_specs=[
            pl.BlockSpec((1, c_in, lt), lambda i, j: (i, 0, j)),
            pl.BlockSpec((c_in, 1), lambda i, j: (0, 0)),
            pl.BlockSpec((c_in, 1), lambda i, j: (0, 0)),
            pl.BlockSpec((mid, c_in), lambda i, j: (0, 0)),
            pl.BlockSpec((mid, 1), lambda i, j: (0, 0)),
        ],
        out_specs=[
            # (Knob: pipeline_mode=pl.Buffered(3) here if the h writeback shows up exposed.)
            pl.BlockSpec((1, mid, lt), lambda i, j: (i, 0, j)),
            pl.BlockSpec((1, 1, mid, 2), lambda i, j: (i, j, 0, 0)),
            pl.BlockSpec((1, 1, mid, 2), lambda i, j: (i, j, 0, 0)),
        ],
        out_shape=[
            jax.ShapeDtypeStruct((n, mid, l), jnp.bfloat16),
            jax.ShapeDtypeStruct((n, n_lt, mid, 2), jnp.bfloat16),
            jax.ShapeDtypeStruct((n, n_lt, mid, 2), jnp.float32),
        ],
        compiler_params=pltpu.CompilerParams(
            dimension_semantics=("parallel", "parallel"),
            vmem_limit_bytes=vmem_limit),
        cost_estimate=pl.CostEstimate(
            flops=2 * n * l * c_in * mid,
            transcendentals=0,
            bytes_accessed=4 * n * c_in * l + 2 * n * mid * l),
    )(xf, scale1.reshape(c_in, 1), shift1.reshape(c_in, 1),
      w1_2d, cb1.reshape(mid, 1))

    # ---- BN2 global stats from per-tile partial sums (biased variance), folded affine ----
    # One-pass E[h^2]-E[h]^2 form clamped at 0 (adequate for typical activation scales).
    tot = jnp.sum(partial_stats, axis=(0, 1))             # (mid, 2)
    cnt = jnp.float32(n * l)
    m2 = tot[:, 0] / cnt
    v2 = jnp.maximum(tot[:, 1] / cnt - m2 * m2, 0.0)
    scale2 = g2 * lax.rsqrt(v2 + EPS)
    shift2 = b2 - m2 * scale2

    # k=3 conv weights: (C_out, mid, 3) -> (3*C_out, mid), taps stacked along rows.
    w2_stacked = jnp.transpose(w2, (2, 0, 1)).reshape(3 * c_out, mid)

    # ---- pass 2: BN2 + ReLU + k=3 conv (padding=1), fused with the channel concat ----
    out = pl.pallas_call(
        _bn_relu_conv3_concat_kernel,
        grid=(n, n_lt),
        in_specs=[
            pl.BlockSpec((1, c_in, lt), lambda i, j: (i, 0, j)),
            pl.BlockSpec((1, mid, lt), lambda i, j: (i, 0, j)),
            pl.BlockSpec((1, 1, mid, 2),
                         lambda i, j: (i, jnp.maximum(j - 1, 0), 0, 0)),
            pl.BlockSpec((1, 1, mid, 2),
                         lambda i, j: (i, jnp.minimum(j + 1, n_lt - 1), 0, 0)),
            pl.BlockSpec((mid, 1), lambda i, j: (0, 0)),
            pl.BlockSpec((mid, 1), lambda i, j: (0, 0)),
            pl.BlockSpec((3 * c_out, mid), lambda i, j: (0, 0)),
            pl.BlockSpec((c_out, 1), lambda i, j: (0, 0)),
        ],
        out_specs=pl.BlockSpec((1, c_in + c_out, lt), lambda i, j: (i, 0, j)),
        out_shape=jax.ShapeDtypeStruct((n, c_in + c_out, l), x_ncl.dtype),
        compiler_params=pltpu.CompilerParams(
            dimension_semantics=("parallel", "parallel"),
            vmem_limit_bytes=vmem_limit),
        cost_estimate=pl.CostEstimate(
            flops=2 * n * l * mid * 3 * c_out,
            transcendentals=0,
            bytes_accessed=2 * n * mid * l + 4 * n * c_in * l
                           + 4 * n * (c_in + c_out) * l),
    )(x_ncl, h, edges, edges, scale2.reshape(mid, 1), shift2.reshape(mid, 1),
      w2_stacked, cb2.reshape(c_out, 1))

    return out


def dense_layer_reference(x, params):
    """Plain-JAX reference of the PyTorch forward (training-mode BN)."""
    g1, b1, w1, cb1, g2, b2, w2, cb2 = params
    m1 = x.mean(axis=(0, 2), keepdims=True)
    v1 = ((x - m1) ** 2).mean(axis=(0, 2), keepdims=True)
    y = (x - m1) / jnp.sqrt(v1 + EPS) * g1[None, :, None] + b1[None, :, None]
    y = jnp.maximum(y, 0.0)
    h = lax.conv_general_dilated(y, w1, (1,), [(0, 0)],
                                 dimension_numbers=('NCH', 'OIH', 'NCH'))
    h = h + cb1[None, :, None]
    m2 = h.mean(axis=(0, 2), keepdims=True)
    v2 = ((h - m2) ** 2).mean(axis=(0, 2), keepdims=True)
    h = (h - m2) / jnp.sqrt(v2 + EPS) * g2[None, :, None] + b2[None, :, None]
    h = jnp.maximum(h, 0.0)
    z = lax.conv_general_dilated(h, w2, (1,), [(1, 1)],
                                 dimension_numbers=('NCH', 'OIH', 'NCH'))
    z = z + cb2[None, :, None]
    return jnp.concatenate([x, z], axis=1)


if __name__ == "__main__":
    N, C_IN, L = 2, 4, 16
    MID, C_OUT = 128, 32

    key = jax.random.PRNGKey(0)
    ks = jax.random.split(key, 9)
    x = jax.random.normal(ks[0], (N, C_IN, L), jnp.float32)

    # Deterministic synthetic parameters (shapes follow the PyTorch module __init__).
    g1 = 1.0 + 0.1 * jax.random.normal(ks[1], (C_IN,), jnp.float32)       # BN1 weight
    b1 = 0.1 * jax.random.normal(ks[2], (C_IN,), jnp.float32)             # BN1 bias
    w1 = 0.1 * jax.random.normal(ks[3], (MID, C_IN, 1), jnp.float32)      # Conv1d k=1 weight
    cb1 = 0.1 * jax.random.normal(ks[4], (MID,), jnp.float32)             # Conv1d k=1 bias
    g2 = 1.0 + 0.1 * jax.random.normal(ks[5], (MID,), jnp.float32)        # BN2 weight
    b2 = 0.1 * jax.random.normal(ks[6], (MID,), jnp.float32)              # BN2 bias
    w2 = 0.1 * jax.random.normal(ks[7], (C_OUT, MID, 3), jnp.float32)     # Conv1d k=3 weight
    cb2 = 0.1 * jax.random.normal(ks[8], (C_OUT,), jnp.float32)           # Conv1d k=3 bias
    params = (g1, b1, w1, cb1, g2, b2, w2, cb2)

    out = jax.block_until_ready(dense_layer(x, params))
    ref = jax.block_until_ready(dense_layer_reference(x, params))

    assert out.shape == (N, C_IN + C_OUT, L), out.shape
    # Tolerance loosened (vs 1e-4) because the intermediate h is stored in bfloat16.
    assert jnp.allclose(out, ref, atol=3e-2, rtol=3e-2), float(jnp.max(jnp.abs(out - ref)))
    print("KERNEL_OK")
</pallas_src>

<mosaic_0001>
module attributes {stable_mosaic.version = 11 : i64} {
  func.func @_bn_relu_conv1x1_kernel(%arg0: i32, %arg1: i32, %arg2: memref<1x4x16xf32, #tpu.memory_space<vmem>>, %arg3: memref<4x1xf32, #tpu.memory_space<vmem>>, %arg4: memref<4x1xf32, #tpu.memory_space<vmem>>, %arg5: memref<128x4xf32, #tpu.memory_space<vmem>>, %arg6: memref<128x1xf32, #tpu.memory_space<vmem>>, %arg7: memref<1x128x16xbf16, #tpu.memory_space<vmem>>, %arg8: memref<1x1x128x2xbf16, #tpu.memory_space<vmem>>, %arg9: memref<1x1x128x2xf32, #tpu.memory_space<vmem>>) attributes {dimension_semantics = [#tpu.dimension_semantics<parallel>, #tpu.dimension_semantics<parallel>], iteration_bounds = array<i64: 2, 1>, scalar_prefetch = 0 : i64, scratch_operands = 0 : i64, tpu.core_type = #tpu.core_type<tc>, window_params = [{transform_indices = @transform_0, window_bounds = array<i64: 1, 4, 16>}, {pipeline_mode = #tpu.pipeline_mode<synchronous>, transform_indices = @transform_1, window_bounds = array<i64: 4, 1>}, {pipeline_mode = #tpu.pipeline_mode<synchronous>, transform_indices = @transform_2, window_bounds = array<i64: 4, 1>}, {pipeline_mode = #tpu.pipeline_mode<synchronous>, transform_indices = @transform_3, window_bounds = array<i64: 128, 4>}, {pipeline_mode = #tpu.pipeline_mode<synchronous>, transform_indices = @transform_4, window_bounds = array<i64: 128, 1>}, {transform_indices = @transform_5, window_bounds = array<i64: 1, 128, 16>}, {transform_indices = @transform_6, window_bounds = array<i64: 1, 1, 128, 2>}, {transform_indices = @transform_7, window_bounds = array<i64: 1, 1, 128, 2>}]} {
    %c0 = arith.constant 0 : index
    %c0_0 = arith.constant 0 : index
    %c0_1 = arith.constant 0 : index
    %0 = vector.load %arg2[%c0, %c0_0, %c0_1] : memref<1x4x16xf32, #tpu.memory_space<vmem>>, vector<1x4x16xf32>
    %1 = vector.shape_cast %0 : vector<1x4x16xf32> to vector<4x16xf32>
    %c0_2 = arith.constant 0 : index
    %c0_3 = arith.constant 0 : index
    %2 = vector.load %arg3[%c0_2, %c0_3] : memref<4x1xf32, #tpu.memory_space<vmem>>, vector<4x1xf32>
    %3 = vector.broadcast %2 : vector<4x1xf32> to vector<4x16xf32>
    %4 = arith.mulf %1, %3 : vector<4x16xf32>
    %c0_4 = arith.constant 0 : index
    %c0_5 = arith.constant 0 : index
    %5 = vector.load %arg4[%c0_4, %c0_5] : memref<4x1xf32, #tpu.memory_space<vmem>>, vector<4x1xf32>
    %6 = vector.broadcast %5 : vector<4x1xf32> to vector<4x16xf32>
    %7 = arith.addf %4, %6 : vector<4x16xf32>
    %cst = arith.constant 0.000000e+00 : f32
    %8 = vector.broadcast %cst : f32 to vector<4x16xf32>
    %9 = arith.maximumf %7, %8 : vector<4x16xf32>
    %c0_6 = arith.constant 0 : index
    %c0_7 = arith.constant 0 : index
    %10 = vector.load %arg5[%c0_6, %c0_7] : memref<128x4xf32, #tpu.memory_space<vmem>>, vector<128x4xf32>
    %cst_8 = arith.constant dense<0.000000e+00> : vector<128x16xf32>
    %11 = tpu.matmul %10, %9, %cst_8 {dimension_numbers = #tpu.dot_dimension_numbers<[1], [0], [0], [1], [0, 0, 1, 1], [], []>} : vector<128x4xf32>, vector<4x16xf32>, vector<128x16xf32> -> vector<128x16xf32>
    %c0_9 = arith.constant 0 : index
    %c0_10 = arith.constant 0 : index
    %12 = vector.load %arg6[%c0_9, %c0_10] : memref<128x1xf32, #tpu.memory_space<vmem>>, vector<128x1xf32>
    %13 = vector.broadcast %12 : vector<128x1xf32> to vector<128x16xf32>
    %14 = arith.addf %11, %13 : vector<128x16xf32>
    %15 = arith.truncf %14 : vector<128x16xf32> to vector<128x16xbf16>
    %c0_11 = arith.constant 0 : index
    %c0_12 = arith.constant 0 : index
    %c0_13 = arith.constant 0 : index
    %16 = vector.load %arg7[%c0_11, %c0_12, %c0_13] : memref<1x128x16xbf16, #tpu.memory_space<vmem>>, vector<1x128x16xbf16>
    %17 = vector.shape_cast %16 : vector<1x128x16xbf16> to vector<128x16xbf16>
    %18 = vector.shape_cast %15 : vector<128x16xbf16> to vector<1x128x16xbf16>
    tpu.vector_store %arg7[%c0_11, %c0_12, %c0_13], %18 {strides = array<i32>} : memref<1x128x16xbf16, #tpu.memory_space<vmem>>, vector<1x128x16xbf16>,
    %19 = vector.extract_strided_slice %14 {offsets = [0, 0], sizes = [128, 1], strides = [1, 1]} : vector<128x16xf32> to vector<128x1xf32>
    %20 = vector.extract_strided_slice %14 {offsets = [0, 15], sizes = [128, 1], strides = [1, 1]} : vector<128x16xf32> to vector<128x1xf32>
    %21 = tpu.concatenate %19, %20 in 1 : vector<128x1xf32>, vector<128x1xf32> -> vector<128x2xf32>
    %22 = arith.truncf %21 : vector<128x2xf32> to vector<128x2xbf16>
    %c0_14 = arith.constant 0 : index
    %c0_15 = arith.constant 0 : index
    %c0_16 = arith.constant 0 : index
    %c0_17 = arith.constant 0 : index
    %23 = vector.load %arg8[%c0_14, %c0_15, %c0_16, %c0_17] : memref<1x1x128x2xbf16, #tpu.memory_space<vmem>>, vector<1x1x128x2xbf16>
    %24 = vector.shape_cast %23 : vector<1x1x128x2xbf16> to vector<128x2xbf16>
    %25 = vector.shape_cast %22 : vector<128x2xbf16> to vector<1x1x128x2xbf16>
    tpu.vector_store %arg8[%c0_14, %c0_15, %c0_16, %c0_17], %25 {strides = array<i32>} : memref<1x1x128x2xbf16, #tpu.memory_space<vmem>>, vector<1x1x128x2xbf16>,
    %cst_18 = arith.constant dense<0.000000e+00> : vector<128xf32>
    %26 = vector.multi_reduction <add>, %14, %cst_18 [1] : vector<128x16xf32> to vector<128xf32>
    %27 = vector.shape_cast %26 : vector<128xf32> to vector<128x1xf32>
    %28 = arith.mulf %14, %14 : vector<128x16xf32>
    %cst_19 = arith.constant dense<0.000000e+00> : vector<128xf32>
    %29 = vector.multi_reduction <add>, %28, %cst_19 [1] : vector<128x16xf32> to vector<128xf32>
    %30 = vector.shape_cast %29 : vector<128xf32> to vector<128x1xf32>
    %31 = tpu.concatenate %27, %30 in 1 : vector<128x1xf32>, vector<128x1xf32> -> vector<128x2xf32>
    %c0_20 = arith.constant 0 : index
    %c0_21 = arith.constant 0 : index
    %c0_22 = arith.constant 0 : index
    %c0_23 = arith.constant 0 : index
    %32 = vector.load %arg9[%c0_20, %c0_21, %c0_22, %c0_23] : memref<1x1x128x2xf32, #tpu.memory_space<vmem>>, vector<1x1x128x2xf32>
    %33 = vector.shape_cast %32 : vector<1x1x128x2xf32> to vector<128x2xf32>
    %34 = vector.shape_cast %31 : vector<128x2xf32> to vector<1x1x128x2xf32>
    tpu.vector_store %arg9[%c0_20, %c0_21, %c0_22, %c0_23], %34 {strides = array<i32>} : memref<1x1x128x2xf32, #tpu.memory_space<vmem>>, vector<1x1x128x2xf32>,
    return
  }
  func.func @transform_0(%arg0: i32, %arg1: i32) -> (i32, i32, i32) {
    %c0_i32 = arith.constant 0 : i32
    %c0_i32_0 = arith.constant 0 : i32
    return %arg0, %c0_i32, %arg1 : i32, i32, i32
  }
  func.func @transform_1(%arg0: i32, %arg1: i32) -> (i32, i32) {
    %c0_i32 = arith.constant 0 : i32
    %c0_i32_0 = arith.constant 0 : i32
    %c0_i32_1 = arith.constant 0 : i32
    return %c0_i32, %c0_i32_0 : i32, i32
  }
  func.func @transform_2(%arg0: i32, %arg1: i32) -> (i32, i32) {
    %c0_i32 = arith.constant 0 : i32
    %c0_i32_0 = arith.constant 0 : i32
    %c0_i32_1 = arith.constant 0 : i32
    return %c0_i32, %c0_i32_0 : i32, i32
  }
  func.func @transform_3(%arg0: i32, %arg1: i32) -> (i32, i32) {
    %c0_i32 = arith.constant 0 : i32
    %c0_i32_0 = arith.constant 0 : i32
    %c0_i32_1 = arith.constant 0 : i32
    return %c0_i32, %c0_i32_0 : i32, i32
  }
  func.func @transform_4(%arg0: i32, %arg1: i32) -> (i32, i32) {
    %c0_i32 = arith.constant 0 : i32
    %c0_i32_0 = arith.constant 0 : i32
    %c0_i32_1 = arith.constant 0 : i32
    return %c0_i32, %c0_i32_0 : i32, i32
  }
  func.func @transform_5(%arg0: i32, %arg1: i32) -> (i32, i32, i32) {
    %c0_i32 = arith.constant 0 : i32
    %c0_i32_0 = arith.constant 0 : i32
    return %arg0, %c0_i32, %arg1 : i32, i32, i32
  }
  func.func @transform_6(%arg0: i32, %arg1: i32) -> (i32, i32, i32, i32) {
    %c0_i32 = arith.constant 0 : i32
    %c0_i32_0 = arith.constant 0 : i32
    %c0_i32_1 = arith.constant 0 : i32
    return %arg0, %arg1, %c0_i32, %c0_i32_0 : i32, i32, i32, i32
  }
  func.func @transform_7(%arg0: i32, %arg1: i32) -> (i32, i32, i32, i32) {
    %c0_i32 = arith.constant 0 : i32
    %c0_i32_0 = arith.constant 0 : i32
    %c0_i32_1 = arith.constant 0 : i32
    return %arg0, %arg1, %c0_i32, %c0_i32_0 : i32, i32, i32, i32
  }
}

</mosaic_0001>

<bundles_post_ra>
// kernel: tpu_custom_call.1
= control target key start
LH: loop header
LB: loop body
LE: loop exit
PB: predicated region body
PF: predicated region fallthrough
CT: control target
= control target key end

     0   :  { %s1249_s24 = smov 0   ;;  %s1251_s25 = smov 0   ;;  %s1749_s0 = inlined_call_operand.vmem [shape: f32[2,4,16], index: 0, kind: input, shape index: {}]   ;;  %s1750_s1 = inlined_call_operand.vmem [shape: f32[4,1], index: 1, kind: input, shape index: {}]   ;;  %s1751_s2 = inlined_call_operand.vmem [shape: f32[4,1], index: 2, kind: input, shape index: {}]   ;;  %s1752_s3 = inlined_call_operand.vmem [shape: f32[128,4], index: 3, kind: input, shape index: {}]   ;;  %s1753_s4 = inlined_call_operand.vmem [shape: f32[128,1], index: 4, kind: input, shape index: {}]   ;;  %s1754_s5 = inlined_call_operand.vmem [shape: bf16[2,128,16], index: 5, kind: output, shape index: {0}]   ;;  %s1755_s6 = inlined_call_operand.vmem [shape: bf16[2,1,128,2], index: 6, kind: output, shape index: {1}]   ;;  %s1756_s7 = inlined_call_operand.vmem [shape: f32[2,1,128,2], index: 7, kind: output, shape index: {2}]  }
   0x1   :  { %s1253_s26 = smov 0  }
   0x2 LB: > { %s30_s27 = sadd.s32 1, %s1201_s25  ;;  %p1081_p0 = scmp.ge.s32.totalorder %s1205_s26, 1  ;;  %s1205_s26 = sphi %s1253_s26, %s18_s26   ;;  %s1201_s25 = sphi %s1251_s25, %s1758_s25   ;;  %s1197_s24 = sphi %s1249_s24, %s1757_s24  }
   0x3   : > { %p32_p1 = scmp.ge.s32.totalorder %s30_s27, 2  ;;  %p264_p2 = scmp.lt.s32.totalorder %s1205_s26, 3 }
   0x5   : > { %s1760_s27 = smov (%p32_p1, %s30_s27), 0  ;;  %p265_p3 = pnand %p1081_p0, %p264_p2 }
   0x6   : > { %p319_p4 = scmp.lt.s32.totalorder (!%p265_p3), %s1197_s24, 1  ;;  %s1208_s28 = smov (!%p265_p3), 114  }
   0x7   : > { %268 = sbr.rel (%p265_p3) target bundleno = 626 (0x272), region = 40 }
   0xc   : > { %v353_v0 = vld [vmem:[%s1750_s1] sm:$0xf]  ;;  %v1207_v1 = vmov 0   ;;  %v385_v5 = vld [vmem:[%s1753_s4 + $0x8] sm:$0xff]  ;;  %v391_v6 = vld [vmem:[%s1753_s4 + $0x38] sm:$0xff]  ;;  %s1762_s24 = smov (!%p319_p4, %s1197_s24), 1 }
   0xd   : > { %1140 = vset.pattern.permute.xlu0 %v1207_v1  ;;  %1141 = vset.pattern.permute.xlu1 %v1207_v1  ;;  %v360_v2 = vld [vmem:[%s1751_s2] sm:$0xf]  ;;  %v389_v7 = vld [vmem:[%s1753_s4 + $0x28] sm:$0xff]  ;;  %v394_v8 = vld [vmem:[%s1753_s4 + $0x50] sm:$0xff]  ;;  %s1082_s14 = sshll.u32 %s1762_s24, 2  ;;  %vm529_vm0 = vcmask 1043456  }
   0xe   : > { %356 = vperm.xlu0 %1140, %v353_v0   ;;  %1142 = vset.pattern.permute.xlu2 %v1207_v1  ;;  %v384_v3 = vld [vmem:[%s1753_s4] sm:$0xff]  ;;  %v397_v10 = vld [vmem:[%s1753_s4 + $0x68] sm:$0xff]  ;;  %v395_v11 = vld [vmem:[%s1753_s4 + $0x58] sm:$0xff]  ;;  %s325_s19 = scalar_lea.vmem %s1749_s0, %s1082_s14  ;;  %vm480_vm1 = vcmask 31744   ;;  %s1108_s20 = sshll.u32 %s1762_s24, 6  ;;  %vm745_vm2 = vcmask 130048  }
   0xf   : > { %402 = vperm.xlu1 %1141, %v384_v3   ;;  %v388_v4 = vld [vmem:[%s1753_s4 + $0x20] sm:$0xff]  ;;  %v398_v12 = vld [vmem:[%s1753_s4 + $0x70] sm:$0xff]  ;;  %v387_v14 = vld [vmem:[%s1753_s4 + $0x18] sm:$0xff]  ;;  %s1409_s23 = scalar_lea.vmem %s1754_s5, %s1108_s20  ;;  %vm614_vm3 = vcmask 125952   ;;  %s1110_s29 = sshll.u32 %s1762_s24, 7  ;;  %vm695_vm4 = vcmask 7168  }
  0x10   : > { %v392_v9 = vld [vmem:[%s1753_s4 + $0x40] sm:$0xff]  ;;  %v386_v13 = vld [vmem:[%s1753_s4 + $0x10] sm:$0xff]  ;;  %v393_v20 = vld [vmem:[%s1753_s4 + $0x48] sm:$0xff]  ;;  %s1572_s9 = scalar_lea.vmem %s1756_s7, %s1110_s29  ;;  %vm874_vm5 = vcmask 15360   ;;  %s1598_s12 = scalar_lea.vmem %s1755_s6, %s1108_s20  ;;  %vm728_vm6 = vcmask 11264  }
  0x11   : > { %412 = vperm.xlu2 %1142, %v386_v13   ;;  %v390_v16 = vld [vmem:[%s1753_s4 + $0x30] sm:$0xff]  ;;  %v352_v17 = vld [vmem:[%s325_s19] sm:$0xf]  ;;  %v369_v28 = vld [vmem:[%s1752_s3 + $0x8] sm:$0xff] }
  0x12   : > { %v368_v23 = vld [vmem:[%s1752_s3] sm:$0xff]  ;;  %v373_v29 = vld [vmem:[%s1752_s3 + $0x28] sm:$0xff]  ;;  %v399_v32 = vld [vmem:[%s1753_s4 + $0x78] sm:$0xff] }
  0x13   : > { %v372_v24 = vld [vmem:[%s1752_s3 + $0x20] sm:$0xff]  ;;  %v377_v30 = vld [vmem:[%s1752_s3 + $0x48] sm:$0xff]  ;;  %v370_v33 = vld [vmem:[%s1752_s3 + $0x10] sm:$0xff] }
  0x14   : > { %v376_v25 = vld [vmem:[%s1752_s3 + $0x40] sm:$0xff]  ;;  %v381_v31 = vld [vmem:[%s1752_s3 + $0x68] sm:$0xff]  ;;  %v374_v34 = vld [vmem:[%s1752_s3 + $0x30] sm:$0xff] }
  0x15   : > { %v380_v26 = vld [vmem:[%s1752_s3 + $0x60] sm:$0xff]  ;;  %v378_v35 = vld [vmem:[%s1752_s3 + $0x50] sm:$0xff]  ;;  %v371_v37 = vld [vmem:[%s1752_s3 + $0x18] sm:$0xff] }
  0x16   : > { %363 = vperm.xlu0 %1140, %v360_v2   ;;  %v396_v27 = vld [vmem:[%s1753_s4 + $0x60] sm:$0xff]  ;;  %v382_v36 = vld [vmem:[%s1752_s3 + $0x70] sm:$0xff]  ;;  %v375_v38 = vld [vmem:[%s1752_s3 + $0x38] sm:$0xff] }
  0x17   : > { %407 = vperm.xlu1 %1141, %v385_v5   ;;  %v379_v39 = vld [vmem:[%s1752_s3 + $0x58] sm:$0xff] }
  0x18   : > { %v383_v40 = vld [vmem:[%s1752_s3 + $0x78] sm:$0xff] }
  0x19   : > { %417 = vperm.xlu2 %1142, %v387_v14  }
  0x1e   : > { %422 = vperm.xlu0 %1140, %v388_v4  }
  0x1f   : > { %427 = vperm.xlu1 %1141, %v389_v7  }
  0x21   : > { %432 = vperm.xlu2 %1142, %v390_v16  }
  0x26   : > { %437 = vperm.xlu0 %1140, %v391_v6  }
  0x27   : > { %442 = vperm.xlu1 %1141, %v392_v9  }
  0x29   : > { %447 = vperm.xlu2 %1142, %v393_v20  }
  0x2e   : > { %452 = vperm.xlu0 %1140, %v394_v8  }
  0x2f   : > { %457 = vperm.xlu1 %1141, %v395_v11  }
  0x31   : > { %462 = vperm.xlu2 %1142, %v396_v27  }
  0x36   : > { %467 = vperm.xlu0 %1140, %v397_v10  }
  0x37   : > { %472 = vperm.xlu1 %1141, %v398_v12  }
  0x39   : > { %477 = vperm.xlu2 %1142, %v399_v32  }
  0x6b   : > { %v413_v41 = vpop.permute.xlu2 %412 }
  0x73   : > { %v1395_v43 = vpop.permute.xlu2 %417 }
  0x7b   : > { %v433_v46 = vpop.permute.xlu2 %432 }
  0x80   : > { %v357_v15 = vpop.permute.xlu0 %356 }
  0x81   : > { %v359_v18 = vmul.f32 %v357_v15, %v352_v17  ;;  %v403_v42 = vpop.permute.xlu1 %402 }
  0x83   : > { %v448_v49 = vpop.permute.xlu2 %447 }
  0x88   : > { %v364_v19 = vpop.permute.xlu0 %363 }
  0x89   : > { %v366_v21 = vadd.f32 %v364_v19, %v359_v18  ;;  %v408_v44 = vpop.permute.xlu1 %407 }
  0x8b   : > { %v367_v22 = vmax.f32 %v366_v21, 0.0  ;;  %v463_v61 = vpop.permute.xlu2 %462 }
  0x8d   : > { %1089 = vmatpush.msk.msra.mxu0 %vm529_vm0, %v367_v22  ;;  %1111 = vmatpush.msk.msra.mxu1 %vm529_vm0, %v367_v22 }
  0x8e   : > { %1112 = vmatpush.msk.msra.mxu2 %vm529_vm0, %v367_v22  ;;  %1113 = vmatpush.msk.msra.mxu3 %vm529_vm0, %v367_v22 }
  0x8f   : > { %1090 = vmatmul.msk.f32.vlgmr.msra.gmra.mxu0 %vm480_vm1, %v368_v23  ;;  %1094 = vmatmul.msk.f32.vlgmr.msra.gmra.mxu1 %vm480_vm1, %v372_v24 }
  0x90   : > { %1098 = vmatmul.msk.f32.vlgmr.msra.gmra.mxu2 %vm480_vm1, %v376_v25  ;;  %1102 = vmatmul.msk.f32.vlgmr.msra.gmra.mxu3 %vm480_vm1, %v380_v26  ;;  %v423_v45 = vpop.permute.xlu0 %422 }
  0x91   : > { %v428_v47 = vpop.permute.xlu1 %427 }
  0x97   : > { %1091 = vmatmul.msk.f32.gmra.mxu0 %vm480_vm1, %v369_v28  ;;  %1095 = vmatmul.msk.f32.gmra.mxu1 %vm480_vm1, %v373_v29 }
  0x98   : > { %1099 = vmatmul.msk.f32.gmra.mxu2 %vm480_vm1, %v377_v30  ;;  %1103 = vmatmul.msk.f32.gmra.mxu3 %vm480_vm1, %v381_v31  ;;  %v1397_v48 = vpop.permute.xlu0 %437 }
  0x99   : > { %v443_v54 = vpop.permute.xlu1 %442 }
  0x9f   : > { %1092 = vmatmul.msk.f32.gmra.mxu0 %vm480_vm1, %v370_v33  ;;  %1096 = vmatmul.msk.f32.gmra.mxu1 %vm480_vm1, %v374_v34 }
  0xa0   : > { %1100 = vmatmul.msk.f32.gmra.mxu2 %vm480_vm1, %v378_v35  ;;  %1104 = vmatmul.msk.f32.gmra.mxu3 %vm480_vm1, %v382_v36  ;;  %v453_v59 = vpop.permute.xlu0 %452 }
  0xa1   : > { %v458_v12 = vpop.permute.xlu1 %457 }
  0xa7   : > { %1093 = vmatmul.msk.f32.gmra.mxu0 %vm480_vm1, %v371_v37  ;;  %1097 = vmatmul.msk.f32.gmra.mxu1 %vm480_vm1, %v375_v38 }
  0xa8   : > { %1101 = vmatmul.msk.f32.gmra.mxu2 %vm480_vm1, %v379_v39  ;;  %1105 = vmatmul.msk.f32.gmra.mxu3 %vm480_vm1, %v383_v40  ;;  %v468_v14 = vpop.permute.xlu0 %467 }
  0xa9   : > { %v473_v31 = vpop.permute.xlu1 %472 }
 0x10c   : > { %v550_v50 = vpop.f32.mrf.mxu0  ;;  %v562_v51 = vpop.f32.mrf.mxu1 }
 0x10d   : > { %v1400_v52 = vadd.f32 %v550_v50, %v403_v42  ;;  %v1402_v53 = vadd.f32 %v562_v51, %v423_v45 }
 0x10f   : > { %v598_v55 = vpack.c.bf16 %v1400_v52, %v1400_v52  ;;  %v602_v56 = vpack.c.bf16 %v1402_v53, %v1402_v53  ;;  %v746_v57 = vsel %vm745_vm2, %v1400_v52, 0.0  ;;  %v798_v58 = vmul.f32 %v1402_v53, %v1402_v53 }
 0x110   : > { %747 = vadd.xlane.f32.xlu2 %v746_v57  ;;  %v758_v11 = vsel %vm745_vm2, %v1402_v53, 0.0  ;;  %v794_v18 = vmul.f32 %v1400_v52, %v1400_v52 }
 0x111   : > { %615 = vst.msk [vmem:[%s1409_s23] sm:$0xf] %vm614_vm3, %v598_v55  ;;  %v822_v60 = vsel %vm745_vm2, %v798_v58, 0.0 }
 0x112   : > { %619 = vst.msk [vmem:[%s1409_s23 + $0x10] sm:$0xf] %vm614_vm3, %v602_v56  ;;  %823 = vadd.xlane.f32.xlu0 %v822_v60  ;;  %v810_v30 = vsel %vm745_vm2, %v794_v18, 0.0 }
 0x113   : > { %v574_v62 = vpop.f32.mrf.mxu2  ;;  %v586_v63 = vpop.f32.mrf.mxu3 }
 0x114   : > { %v1424_v0 = vadd.f32 %v574_v62, %v443_v54  ;;  %v1426_v1 = vadd.f32 %v586_v63, %v463_v61  ;;  %v553_v2 = vpop.f32.mrf.mxu0  ;;  %v565_v3 = vpop.f32.mrf.mxu1 }
 0x115   : > { %v1428_v4 = vadd.f32 %v553_v2, %v408_v44  ;;  %v1430_v5 = vadd.f32 %v565_v3, %v428_v47 }
 0x116   : > { %v606_v6 = vpack.c.bf16 %v1424_v0, %v1424_v0  ;;  %v610_v7 = vpack.c.bf16 %v1426_v1, %v1426_v1  ;;  %v782_v8 = vsel %vm745_vm2, %v1426_v1, 0.0  ;;  %v770_v13 = vsel %vm745_vm2, %v1424_v0, 0.0 }
 0x117   : > { %v599_v9 = vpack.c.bf16 %v1428_v4, %v1428_v4  ;;  %v603_v10 = vpack.c.bf16 %v1430_v5, %v1430_v5  ;;  %783 = vadd.xlane.f32.xlu1 %v782_v8  ;;  %v802_v15 = vmul.f32 %v1424_v0, %v1424_v0  ;;  %v799_v32 = vmul.f32 %v1430_v5, %v1430_v5 }
 0x118   : > { %623 = vst.msk [vmem:[%s1409_s23 + $0x20] sm:$0xf] %vm614_vm3, %v606_v6  ;;  %759 = vadd.xlane.f32.xlu2 %v758_v11  ;;  %v1143_v51 = vpack.i.bf16 %v1428_v4, %v1400_v52  ;;  %v1148_v56 = vpack.i.bf16 %v1430_v5, %v1402_v53  ;;  %v749_v58 = vsel %vm745_vm2, %v1428_v4, 0.0  ;;  %v761_v60 = vsel %vm745_vm2, %v1430_v5, 0.0 }
 0x119   : > { %627 = vst.msk [vmem:[%s1409_s23 + $0x30] sm:$0xf] %vm614_vm3, %v610_v7  ;;  %v834_v27 = vsel %vm745_vm2, %v802_v15, 0.0  ;;  %v825_v44 = vsel %vm745_vm2, %v799_v32, 0.0  ;;  %v795_v62 = vmul.f32 %v1428_v4, %v1428_v4 }
 0x11a   : > { %616 = vst.msk [vmem:[%s1409_s23 + $0x4] sm:$0xf] %vm614_vm3, %v599_v9  ;;  %771 = vadd.xlane.f32.xlu0 %v770_v13 }
 0x11b   : > { %620 = vst.msk [vmem:[%s1409_s23 + $0x14] sm:$0xf] %vm614_vm3, %v603_v10  ;;  %v577_v16 = vpop.f32.mrf.mxu2  ;;  %v589_v17 = vpop.f32.mrf.mxu3  ;;  %v813_v63 = vsel %vm745_vm2, %v795_v62, 0.0 }
 0x11c   : > { %v1458_v19 = vadd.f32 %v577_v16, %v448_v49  ;;  %v1460_v20 = vadd.f32 %v589_v17, %v468_v14  ;;  %v556_v21 = vpop.f32.mrf.mxu0  ;;  %v568_v22 = vpop.f32.mrf.mxu1 }
 0x11d   : > { %v1462_v23 = vadd.f32 %v556_v21, %v413_v41  ;;  %v1464_v24 = vadd.f32 %v568_v22, %v433_v46 }
 0x11e   : > { %v607_v25 = vpack.c.bf16 %v1458_v19, %v1458_v19  ;;  %v611_v26 = vpack.c.bf16 %v1460_v20, %v1460_v20  ;;  %v1153_v57 = vpack.i.bf16 %v1458_v19, %v1424_v0  ;;  %v785_v2 = vsel %vm745_vm2, %v1460_v20, 0.0 }
 0x11f   : > { %v600_v28 = vpack.c.bf16 %v1462_v23, %v1462_v23  ;;  %v604_v29 = vpack.c.bf16 %v1464_v24, %v1464_v24  ;;  %835 = vadd.xlane.f32.xlu1 %v834_v27  ;;  %v773_v3 = vsel %vm745_vm2, %v1458_v19, 0.0  ;;  %v803_v6 = vmul.f32 %v1458_v19, %v1458_v19 }
 0x120   : > { %624 = vst.msk [vmem:[%s1409_s23 + $0x24] sm:$0xf] %vm614_vm3, %v607_v25  ;;  %811 = vadd.xlane.f32.xlu2 %v810_v30  ;;  %v752_v8 = vsel %vm745_vm2, %v1462_v23, 0.0  ;;  %v800_v9 = vmul.f32 %v1464_v24, %v1464_v24  ;;  %v764_v11 = vsel %vm745_vm2, %v1464_v24, 0.0  ;;  %v796_v13 = vmul.f32 %v1462_v23, %v1462_v23 }
 0x121   : > { %628 = vst.msk [vmem:[%s1409_s23 + $0x34] sm:$0xf] %vm614_vm3, %v611_v26  ;;  %v837_v7 = vsel %vm745_vm2, %v803_v6, 0.0 }
 0x122   : > { %617 = vst.msk [vmem:[%s1409_s23 + $0x8] sm:$0xf] %vm614_vm3, %v600_v28  ;;  %v828_v10 = vsel %vm745_vm2, %v800_v9, 0.0  ;;  %v816_v15 = vsel %vm745_vm2, %v796_v13, 0.0 }
 0x123   : > { %621 = vst.msk [vmem:[%s1409_s23 + $0x18] sm:$0xf] %vm614_vm3, %v604_v29  ;;  %v580_v33 = vpop.f32.mrf.mxu2  ;;  %v592_v34 = vpop.f32.mrf.mxu3 }
 0x124   : > { %v1486_v35 = vadd.f32 %v580_v33, %v453_v59  ;;  %v1488_v36 = vadd.f32 %v592_v34, %v473_v31  ;;  %v559_v37 = vpop.f32.mrf.mxu0  ;;  %v571_v38 = vpop.f32.mrf.mxu1  ;;  %v806_v59 = vmul.f32 %v1426_v1, %v1426_v1 }
 0x125   : > { %v1491_v39 = vadd.f32 %v559_v37, %v1395_v43  ;;  %v1494_v40 = vadd.f32 %v571_v38, %v1397_v48  ;;  %v478_v43 = vpop.permute.xlu2 %477 }
 0x126   : > { %v608_v41 = vpack.c.bf16 %v1486_v35, %v1486_v35  ;;  %v612_v42 = vpack.c.bf16 %v1488_v36, %v1488_v36  ;;  %v846_v61 = vsel %vm745_vm2, %v806_v59, 0.0  ;;  %v776_v14 = vsel %vm745_vm2, %v1486_v35, 0.0 }
 0x127   : > { %v601_v45 = vpack.c.bf16 %v1491_v39, %v1491_v39  ;;  %v605_v46 = vpack.c.bf16 %v1494_v40, %v1494_v40  ;;  %826 = vadd.xlane.f32.xlu1 %v825_v44  ;;  %v755_v18 = vsel %vm745_vm2, %v1491_v39, 0.0  ;;  %v767_v26 = vsel %vm745_vm2, %v1494_v40, 0.0 }
 0x128   : > { %625 = vst.msk [vmem:[%s1409_s23 + $0x28] sm:$0xf] %vm614_vm3, %v608_v41  ;;  %v797_v32 = vmul.f32 %v1491_v39, %v1491_v39  ;;  %v1163_v34 = vpack.i.bf16 %v1491_v39, %v1462_v23 }
 0x129   : > { %629 = vst.msk [vmem:[%s1409_s23 + $0x38] sm:$0xf] %vm614_vm3, %v612_v42 }
 0x12a   : > { %618 = vst.msk [vmem:[%s1409_s23 + $0xc] sm:$0xf] %vm614_vm3, %v601_v45  ;;  %v819_v33 = vsel %vm745_vm2, %v797_v32, 0.0 }
 0x12b   : > { %622 = vst.msk [vmem:[%s1409_s23 + $0x1c] sm:$0xf] %vm614_vm3, %v605_v46  ;;  %v583_v47 = vpop.f32.mrf.mxu2  ;;  %v595_v48 = vpop.f32.mrf.mxu3 }
 0x12c   : > { %v1513_v49 = vadd.f32 %v583_v47, %v458_v12  ;;  %v1515_v50 = vadd.f32 %v595_v48, %v478_v43  ;;  %v1158_v12 = vpack.i.bf16 %v1460_v20, %v1426_v1 }
 0x12e   : > { %v609_v54 = vpack.c.bf16 %v1513_v49, %v1513_v49  ;;  %v613_v55 = vpack.c.bf16 %v1515_v50, %v1515_v50  ;;  %1144 = vrot.lane.b32.xlu0 %v1143_v51, %s1208_s28  ;;  %v1178_v51 = vpack.i.bf16 %v1515_v50, %v1488_v36 }
 0x130   : > { %626 = vst.msk [vmem:[%s1409_s23 + $0x2c] sm:$0xf] %vm614_vm3, %v609_v54 }
 0x131   : > { %630 = vst.msk [vmem:[%s1409_s23 + $0x3c] sm:$0xf] %vm614_vm3, %v613_v55 }
 0x138   : > { %1149 = vrot.lane.b32.xlu2 %v1148_v56, %s1208_s28  ;;  %v788_v56 = vsel %vm745_vm2, %v1488_v36, 0.0 }
 0x140   : > { %1154 = vrot.lane.b32.xlu1 %v1153_v57, %s1208_s28 }
 0x158   : > { %750 = vadd.xlane.f32.xlu0 %v749_v58 }
 0x160   : > { %762 = vadd.xlane.f32.xlu0 %v761_v60 }
 0x161   : > { %847 = vadd.xlane.f32.xlu2 %v846_v61 }
 0x168   : > { %814 = vadd.xlane.f32.xlu0 %v813_v63 }
 0x169   : > { %786 = vadd.xlane.f32.xlu2 %v785_v2  ;;  %v1168_v2 = vpack.i.bf16 %v1494_v40, %v1464_v24 }
 0x16a   : > { %774 = vadd.xlane.f32.xlu1 %v773_v3 }
 0x171   : > { %838 = vadd.xlane.f32.xlu2 %v837_v7 }
 0x172   : > { %753 = vadd.xlane.f32.xlu1 %v752_v8 }
 0x179   : > { %829 = vadd.xlane.f32.xlu2 %v828_v10 }
 0x17a   : > { %765 = vadd.xlane.f32.xlu1 %v764_v11  ;;  %v809_v11 = vmul.f32 %v1515_v50, %v1515_v50 }
 0x17c   : > { %1159 = vrot.lane.b32.xlu0 %v1158_v12, %s1208_s28  ;;  %v808_v12 = vmul.f32 %v1488_v36, %v1488_v36  ;;  %v855_v13 = vsel %vm745_vm2, %v809_v11, 0.0 }
 0x181   : > { %777 = vadd.xlane.f32.xlu2 %v776_v14 }
 0x182   : > { %817 = vadd.xlane.f32.xlu1 %v816_v15 }
 0x183   : > { %v748_v16 = vpop.xlane.xlu2 %747 }
 0x185   : > { %v824_v17 = vpop.xlane.xlu0 %823 }
 0x189   : > { %756 = vadd.xlane.f32.xlu2 %v755_v18 }
 0x18a   : > { %v1574_v21 = vpop.xlane.xlu1 %783 }
 0x18b   : > { %v760_v22 = vpop.xlane.xlu2 %759 }
 0x18c   : > { %v862_v25 = vsel %vm695_vm4, %v760_v22, %v824_v17 }
 0x18d   : > { %879 = vst.msk [vmem:[%s1572_s9 + $0x20] sm:$0xff] %vm874_vm5, %v862_v25  ;;  %v772_v27 = vpop.xlane.xlu0 %771 }
 0x191   : > { %768 = vadd.xlane.f32.xlu2 %v767_v26 }
 0x192   : > { %v836_v28 = vpop.xlane.xlu1 %835 }
 0x193   : > { %v866_v29 = vsel %vm695_vm4, %v772_v27, %v836_v28  ;;  %v812_v30 = vpop.xlane.xlu2 %811  ;;  %v801_v28 = vmul.f32 %v1494_v40, %v1494_v40 }
 0x194   : > { %883 = vst.msk [vmem:[%s1572_s9 + $0x40] sm:$0xff] %vm874_vm5, %v866_v29  ;;  %v858_v31 = vsel %vm695_vm4, %v748_v16, %v812_v30  ;;  %v852_v16 = vsel %vm745_vm2, %v808_v12, 0.0 }
 0x195   : > { %875 = vst.msk [vmem:[%s1572_s9] sm:$0xff] %vm874_vm5, %v858_v31  ;;  %v831_v29 = vsel %vm745_vm2, %v801_v28, 0.0 }
 0x199   : > { %820 = vadd.xlane.f32.xlu2 %v819_v33 }
 0x19a   : > { %v827_v57 = vpop.xlane.xlu1 %826 }
 0x19b   : > { %1164 = vrot.lane.b32.xlu1 %v1163_v34, %s1208_s28  ;;  %v1150_v37 = vpop.permute.xlu2 %1149 }
 0x19c   : > { %v1152_v38 = vunpack.i.h.bf16 %v1150_v37  ;;  %v1151_v41 = vunpack.i.l.bf16 %v1150_v37 }
 0x19e   : > { %v701_v42 = vsel %vm695_vm4, %v1430_v5, %v1152_v38  ;;  %v700_v44 = vsel %vm695_vm4, %v1402_v53, %v1151_v41 }
 0x19f   : > { %v717_v45 = vpack.c.bf16 %v701_v42, %v701_v42  ;;  %v716_v46 = vpack.c.bf16 %v700_v44, %v700_v44 }
 0x1a0   : > { %v1145_v43 = vpop.permute.xlu0 %1144 }
 0x1a1   : > { %734 = vst.msk [vmem:[%s1598_s12 + $0x14] sm:$0xf] %vm728_vm6, %v717_v45  ;;  %v1147_v47 = vunpack.i.h.bf16 %v1145_v43  ;;  %v1146_v48 = vunpack.i.l.bf16 %v1145_v43  ;;  %v779_v45 = vsel %vm745_vm2, %v1513_v49, 0.0 }
 0x1a2   : > { %733 = vst.msk [vmem:[%s1598_s12 + $0x10] sm:$0xf] %vm728_vm6, %v716_v46 }
 0x1a3   : > { %v697_v5 = vsel %vm695_vm4, %v1428_v4, %v1147_v47  ;;  %v696_v54 = vsel %vm695_vm4, %v1400_v52, %v1146_v48  ;;  %1179 = vrot.lane.b32.xlu1 %v1178_v51, %s1208_s28  ;;  %v1173_v4 = vpack.i.bf16 %v1513_v49, %v1486_v35 }
 0x1a4   : > { %v713_v53 = vpack.c.bf16 %v697_v5, %v697_v5  ;;  %v712_v55 = vpack.c.bf16 %v696_v54, %v696_v54 }
 0x1a6   : > { %730 = vst.msk [vmem:[%s1598_s12 + $0x4] sm:$0xf] %vm728_vm6, %v713_v53  ;;  %789 = vadd.xlane.f32.xlu0 %v788_v56 }
 0x1a7   : > { %729 = vst.msk [vmem:[%s1598_s12] sm:$0xf] %vm728_vm6, %v712_v55 }
 0x1b1   : > { %1174 = vrot.lane.b32.xlu2 %v1173_v4, %s1208_s28 }
 0x1b2   : > { %v1155_v52 = vpop.permute.xlu1 %1154 }
 0x1b3   : > { %v1157_v58 = vunpack.i.h.bf16 %v1155_v52  ;;  %v1156_v59 = vunpack.i.l.bf16 %v1155_v52 }
 0x1b5   : > { %v705_v60 = vsel %vm695_vm4, %v1458_v19, %v1157_v58  ;;  %v704_v61 = vsel %vm695_vm4, %v1424_v0, %v1156_v59  ;;  %v791_v19 = vsel %vm745_vm2, %v1515_v50, 0.0  ;;  %v805_v0 = vmul.f32 %v1513_v49, %v1513_v49 }
 0x1b6   : > { %v721_v62 = vpack.c.bf16 %v705_v60, %v705_v60  ;;  %v720_v63 = vpack.c.bf16 %v704_v61, %v704_v61 }
 0x1b7   : > { %v843_v8 = vsel %vm745_vm2, %v805_v0, 0.0 }
 0x1b8   : > { %738 = vst.msk [vmem:[%s1598_s12 + $0x24] sm:$0xf] %vm728_vm6, %v721_v62 }
 0x1b9   : > { %737 = vst.msk [vmem:[%s1598_s12 + $0x20] sm:$0xf] %vm728_vm6, %v720_v63 }
 0x1ba   : > { %1169 = vrot.lane.b32.xlu0 %v1168_v2, %s1208_s28 }
 0x1cb   : > { %v751_v3 = vpop.xlane.xlu0 %750 }
 0x1cd   : > { %792 = vadd.xlane.f32.xlu1 %v791_v19 }
 0x1d3   : > { %v763_v6 = vpop.xlane.xlu0 %762 }
 0x1d4   : > { %v863_v7 = vsel %vm695_vm4, %v763_v6, %v827_v57  ;;  %v848_v9 = vpop.xlane.xlu2 %847 }
 0x1d5   : > { %880 = vst.msk [vmem:[%s1572_s9 + $0x28] sm:$0xff] %vm874_vm5, %v863_v7  ;;  %844 = vadd.xlane.f32.xlu1 %v843_v8  ;;  %v870_v10 = vsel %vm695_vm4, %v1574_v21, %v848_v9  ;;  %v804_v21 = vmul.f32 %v1486_v35, %v1486_v35 }
 0x1d6   : > { %887 = vst.msk [vmem:[%s1572_s9 + $0x60] sm:$0xff] %vm874_vm5, %v870_v10 }
 0x1d7   : > { %v840_v22 = vsel %vm745_vm2, %v804_v21, 0.0 }
 0x1da   : > { %856 = vadd.xlane.f32.xlu2 %v855_v13 }
 0x1db   : > { %v815_v14 = vpop.xlane.xlu0 %814 }
 0x1dc   : > { %v859_v15 = vsel %vm695_vm4, %v751_v3, %v815_v14  ;;  %v1654_v17 = vpop.xlane.xlu2 %786 }
 0x1dd   : > { %876 = vst.msk [vmem:[%s1572_s9 + $0x8] sm:$0xff] %vm874_vm5, %v859_v15  ;;  %v775_v18 = vpop.xlane.xlu1 %774  ;;  %853 = vadd.xlane.f32.xlu1 %v852_v16 }
 0x1e4   : > { %841 = vadd.xlane.f32.xlu0 %v840_v22  ;;  %v839_v25 = vpop.xlane.xlu2 %838 }
 0x1e5   : > { %v754_v26 = vpop.xlane.xlu1 %753  ;;  %v867_v27 = vsel %vm695_vm4, %v775_v18, %v839_v25 }
 0x1e6   : > { %884 = vst.msk [vmem:[%s1572_s9 + $0x48] sm:$0xff] %vm874_vm5, %v867_v27 }
 0x1ec   : > { %832 = vadd.xlane.f32.xlu0 %v831_v29  ;;  %v830_v30 = vpop.xlane.xlu2 %829 }
 0x1ed   : > { %v766_v31 = vpop.xlane.xlu1 %765 }
 0x1ee   : > { %v864_v32 = vsel %vm695_vm4, %v766_v31, %v830_v30  ;;  %v1160_v33 = vpop.permute.xlu0 %1159 }
 0x1ef   : > { %881 = vst.msk [vmem:[%s1572_s9 + $0x30] sm:$0xff] %vm874_vm5, %v864_v32  ;;  %v1162_v34 = vunpack.i.h.bf16 %v1160_v33  ;;  %v1161_v37 = vunpack.i.l.bf16 %v1160_v33 }
 0x1f1   : > { %v709_v38 = vsel %vm695_vm4, %v1460_v20, %v1162_v34  ;;  %v708_v41 = vsel %vm695_vm4, %v1426_v1, %v1161_v37  ;;  %v807_v1 = vmul.f32 %v1460_v20, %v1460_v20 }
 0x1f2   : > { %v725_v42 = vpack.c.bf16 %v709_v38, %v709_v38  ;;  %v724_v44 = vpack.c.bf16 %v708_v41, %v708_v41 }
 0x1f3   : > { %v849_v48 = vsel %vm745_vm2, %v807_v1, 0.0 }
 0x1f4   : > { %742 = vst.msk [vmem:[%s1598_s12 + $0x34] sm:$0xf] %vm728_vm6, %v725_v42  ;;  %780 = vadd.xlane.f32.xlu0 %v779_v45  ;;  %v778_v46 = vpop.xlane.xlu2 %777 }
 0x1f5   : > { %741 = vst.msk [vmem:[%s1598_s12 + $0x30] sm:$0xf] %vm728_vm6, %v724_v44  ;;  %v818_v43 = vpop.xlane.xlu1 %817 }
 0x1f6   : > { %v860_v47 = vsel %vm695_vm4, %v754_v26, %v818_v43 }
 0x1f7   : > { %877 = vst.msk [vmem:[%s1572_s9 + $0x10] sm:$0xff] %vm874_vm5, %v860_v47 }
 0x1fc   : > { %850 = vadd.xlane.f32.xlu0 %v849_v48  ;;  %v757_v51 = vpop.xlane.xlu2 %756 }
 0x204   : > { %v769_v5 = vpop.xlane.xlu2 %768 }
 0x20c   : > { %v821_v54 = vpop.xlane.xlu2 %820 }
 0x20d   : > { %v1165_v53 = vpop.permute.xlu1 %1164  ;;  %v861_v55 = vsel %vm695_vm4, %v757_v51, %v821_v54 }
 0x20e   : > { %v1167_v56 = vunpack.i.h.bf16 %v1165_v53  ;;  %v1166_v57 = vunpack.i.l.bf16 %v1165_v53  ;;  %878 = vst.msk [vmem:[%s1572_s9 + $0x18] sm:$0xff] %vm874_vm5, %v861_v55 }
 0x210   : > { %v699_v4 = vsel %vm695_vm4, %v1491_v39, %v1167_v56  ;;  %v698_v20 = vsel %vm695_vm4, %v1462_v23, %v1166_v57 }
 0x211   : > { %v715_v52 = vpack.c.bf16 %v699_v4, %v699_v4  ;;  %v714_v58 = vpack.c.bf16 %v698_v20, %v698_v20 }
 0x213   : > { %732 = vst.msk [vmem:[%s1598_s12 + $0xc] sm:$0xf] %vm728_vm6, %v715_v52 }
 0x214   : > { %731 = vst.msk [vmem:[%s1598_s12 + $0x8] sm:$0xf] %vm728_vm6, %v714_v58  ;;  %v1175_v59 = vpop.permute.xlu2 %1174 }
 0x215   : > { %v1180_v60 = vpop.permute.xlu1 %1179  ;;  %v1177_v61 = vunpack.i.h.bf16 %v1175_v59  ;;  %v1176_v62 = vunpack.i.l.bf16 %v1175_v59 }
 0x216   : > { %v1182_v63 = vunpack.i.h.bf16 %v1180_v60  ;;  %v1181_v2 = vunpack.i.l.bf16 %v1180_v60 }
 0x217   : > { %v707_v39 = vsel %vm695_vm4, %v1513_v49, %v1177_v61  ;;  %v706_v23 = vsel %vm695_vm4, %v1486_v35, %v1176_v62 }
 0x218   : > { %v711_v3 = vsel %vm695_vm4, %v1515_v50, %v1182_v63  ;;  %v710_v19 = vsel %vm695_vm4, %v1488_v36, %v1181_v2  ;;  %v723_v0 = vpack.c.bf16 %v707_v39, %v707_v39  ;;  %v722_v8 = vpack.c.bf16 %v706_v23, %v706_v23 }
 0x219   : > { %v727_v6 = vpack.c.bf16 %v711_v3, %v711_v3  ;;  %v726_v7 = vpack.c.bf16 %v710_v19, %v710_v19  ;;  %v790_v35 = vpop.xlane.xlu0 %789 }
 0x21a   : > { %740 = vst.msk [vmem:[%s1598_s12 + $0x2c] sm:$0xf] %vm728_vm6, %v723_v0 }
 0x21b   : > { %744 = vst.msk [vmem:[%s1598_s12 + $0x3c] sm:$0xf] %vm728_vm6, %v727_v6 }
 0x21c   : > { %743 = vst.msk [vmem:[%s1598_s12 + $0x38] sm:$0xf] %vm728_vm6, %v726_v7 }
 0x21d   : > { %739 = vst.msk [vmem:[%s1598_s12 + $0x28] sm:$0xf] %vm728_vm6, %v722_v8 }
 0x22c   : > { %v1170_v49 = vpop.permute.xlu0 %1169 }
 0x22d   : > { %v1172_v50 = vunpack.i.h.bf16 %v1170_v49  ;;  %v1171_v36 = vunpack.i.l.bf16 %v1170_v49 }
 0x22f   : > { %v703_v9 = vsel %vm695_vm4, %v1494_v40, %v1172_v50  ;;  %v702_v10 = vsel %vm695_vm4, %v1464_v24, %v1171_v36 }
 0x230   : > { %v719_v11 = vpack.c.bf16 %v703_v9, %v703_v9  ;;  %v718_v12 = vpack.c.bf16 %v702_v10, %v702_v10 }
 0x232   : > { %736 = vst.msk [vmem:[%s1598_s12 + $0x1c] sm:$0xf] %vm728_vm6, %v719_v11 }
 0x233   : > { %735 = vst.msk [vmem:[%s1598_s12 + $0x18] sm:$0xf] %vm728_vm6, %v718_v12 }
 0x240   : > { %v793_v13 = vpop.xlane.xlu1 %792 }
 0x248   : > { %v845_v14 = vpop.xlane.xlu1 %844 }
 0x24d   : > { %v857_v15 = vpop.xlane.xlu2 %856 }
 0x24e   : > { %v873_v16 = vsel %vm695_vm4, %v793_v13, %v857_v15 }
 0x24f   : > { %890 = vst.msk [vmem:[%s1572_s9 + $0x78] sm:$0xff] %vm874_vm5, %v873_v16 }
 0x250   : > { %v854_v40 = vpop.xlane.xlu1 %853 }
 0x251   : > { %v872_v18 = vsel %vm695_vm4, %v790_v35, %v854_v40 }
 0x252   : > { %889 = vst.msk [vmem:[%s1572_s9 + $0x70] sm:$0xff] %vm874_vm5, %v872_v18 }
 0x257   : > { %v842_v24 = vpop.xlane.xlu0 %841 }
 0x258   : > { %v868_v21 = vsel %vm695_vm4, %v778_v46, %v842_v24 }
 0x259   : > { %885 = vst.msk [vmem:[%s1572_s9 + $0x50] sm:$0xff] %vm874_vm5, %v868_v21 }
 0x25f   : > { %v833_v22 = vpop.xlane.xlu0 %832 }
 0x260   : > { %v865_v25 = vsel %vm695_vm4, %v769_v5, %v833_v22 }
 0x261   : > { %882 = vst.msk [vmem:[%s1572_s9 + $0x38] sm:$0xff] %vm874_vm5, %v865_v25 }
 0x267   : > { %v781_v26 = vpop.xlane.xlu0 %780 }
 0x268   : > { %v869_v27 = vsel %vm695_vm4, %v781_v26, %v845_v14 }
 0x269   : > { %886 = vst.msk [vmem:[%s1572_s9 + $0x58] sm:$0xff] %vm874_vm5, %v869_v27 }
 0x26f   : > { %v851_v28 = vpop.xlane.xlu0 %850 }
 0x270   : > { %v871_v29 = vsel %vm695_vm4, %v1654_v17, %v851_v28 }
 0x271   : > { %888 = vst.msk [vmem:[%s1572_s9 + $0x68] sm:$0xff] %vm874_vm5, %v871_v29 }
 0x272 PF: > { %s18_s26 = sadd.s32 1, %s1205_s26   ;;  %s1757_s24 = smov %s1201_s25 }
 0x273   : > { %p15_p5 = scmp.ge.s32.totalorder %s18_s26, 4   ;;  %s1758_s25 = smov %s1760_s27 }
 0x275   :  { %17 = sbr.rel (!%p15_p5) target bundleno = 2 (0x2), region = 94 }

</bundles_post_ra>
